<compile_context>
chip_gen: v6e
topology: v6e:2x2x1
jax: 0.10.0
libtpu: 0.0.40
codegen_flags: <defaults>
</compile_context>

<pallas_src>
import numpy as np
import jax
import jax.numpy as jnp
from jax.experimental import pallas as pl
from jax.experimental.pallas import tpu as pltpu

NUM_ATT_CLASSES = 620
NUM_SAMPLE_CATS = 50

_TM_CAP = 1024                     # [1024, 620] f32 logits + bf16 targets, double
                                   # buffered ~= 7.6 MiB VMEM -> fits all generations
_VMEM_LIMIT = 32 * 1024 * 1024     # explicit scoped-VMEM limit (covers v5e default)


def _choose_tile(n):
    # Single tile covering the whole array when it fits (full-dim blocks are always
    # layout-legal regardless of dtype); otherwise the largest aligned tile.
    return n if n <= _TM_CAP else _TM_CAP


# ----------------------------------------------------------------------------
# Pallas kernels (closures over static tile size / real row count)
# ----------------------------------------------------------------------------
def _make_bce_kernel(tm, n_real):
    """Masked, numerically-stable BCE-with-logits partial sum -> (8,128) block."""
    def kernel(x_ref, t_ref, m_ref, o_ref):
        x = x_ref[...].astype(jnp.float32)
        t = t_ref[...].astype(jnp.float32)
        m = m_ref[...].astype(jnp.float32)                 # [1, C] federated mask
        # max(x,0) - x*t + log1p(exp(-|x|)) == PyTorch's stable formulation
        loss = jnp.maximum(x, 0.0) - x * t + jnp.log1p(jnp.exp(-jnp.abs(x)))
        # Mask rows past n_real (last tile may read OOB garbage) *before* the
        # column-mask multiply, with a select so NaN/Inf garbage never propagates.
        rows = pl.program_id(0) * tm + jax.lax.broadcasted_iota(jnp.int32, (tm, 1), 0)
        loss = jnp.where(rows < n_real, loss, 0.0)
        total = jnp.sum(loss * m, keepdims=True)           # (1, 1)

        row_i = jax.lax.broadcasted_iota(jnp.int32, (8, 128), 0)
        lane = jax.lax.broadcasted_iota(jnp.int32, (8, 128), 1)
        o_ref[...] = jnp.where((row_i == 0) & (lane == 0), total, 0.0)
    return kernel


def _make_focal_kernel(tm, n_real):
    """CenterNet focal pieces (module's `_neg_loss`) -> (8,128) partial-sum block."""
    def kernel(x_ref, t_ref, o_ref):
        x = x_ref[...].astype(jnp.float32)
        t = t_ref[...].astype(jnp.float32)
        # log(p) = -softplus(-x), log(1-p) = -softplus(x); shared exp/log1p terms.
        e = jnp.exp(-jnp.abs(x))                           # EUP
        sp = jnp.log1p(e)                                  # EUP
        log_p = jnp.minimum(x, 0.0) - sp
        log_1mp = -jnp.maximum(x, 0.0) - sp
        r = pl.reciprocal(1.0 + e, approx=True)            # EUP, 1/(1+exp(-|x|))
        p = jnp.where(x >= 0.0, r, e * r)                  # sigmoid(x), no cancellation
        one_m_p = jnp.where(x >= 0.0, e * r, r)            # 1-sigmoid(x), no cancellation

        pos_inds = (t == 1.0).astype(jnp.float32)
        neg_inds = (t < 1.0).astype(jnp.float32)
        pos_loss = log_p * one_m_p * one_m_p * pos_inds
        neg_loss = log_1mp * p * p * neg_inds

        rows = pl.program_id(0) * tm + jax.lax.broadcasted_iota(jnp.int32, (tm, 1), 0)
        valid = rows < n_real
        pos_loss = jnp.where(valid, pos_loss, 0.0)
        neg_loss = jnp.where(valid, neg_loss, 0.0)
        pos_inds = jnp.where(valid, pos_inds, 0.0)

        ps = jnp.sum(pos_loss, keepdims=True)              # (1, 1)
        ns = jnp.sum(neg_loss, keepdims=True)
        npos = jnp.sum(pos_inds, keepdims=True)

        row_i = jax.lax.broadcasted_iota(jnp.int32, (8, 128), 0)
        lane = jax.lax.broadcasted_iota(jnp.int32, (8, 128), 1)
        on_r0 = row_i == 0
        o_ref[...] = (jnp.where(on_r0 & (lane == 0), ps, 0.0)
                      + jnp.where(on_r0 & (lane == 1), ns, 0.0)
                      + jnp.where(on_r0 & (lane == 2), npos, 0.0))
    return kernel


# ----------------------------------------------------------------------------
# Kernel wrappers
# ----------------------------------------------------------------------------
def bce_fed_loss(logits, targets, col_mask, k_sel):
    """Mean BCE-with-logits over the k_sel selected classes (lane-dense mask)."""
    N, C = logits.shape
    tm = _choose_tile(N)
    n_tiles = (N + tm - 1) // tm

    parts = pl.pallas_call(
        _make_bce_kernel(tm, N),
        out_shape=jax.ShapeDtypeStruct((n_tiles * 8, 128), jnp.float32),
        grid=(n_tiles,),
        in_specs=[pl.BlockSpec((tm, C), lambda i: (i, 0)),
                  pl.BlockSpec((tm, C), lambda i: (i, 0)),
                  pl.BlockSpec((1, C), lambda i: (0, 0))],
        out_specs=pl.BlockSpec((8, 128), lambda i: (i, 0)),
        compiler_params=pltpu.CompilerParams(
            dimension_semantics=("parallel",),
            vmem_limit_bytes=_VMEM_LIMIT),
    )(logits, targets, col_mask.reshape(1, C))
    # only (row 0, lane 0) of each per-tile block is non-zero
    return jnp.sum(parts) / (jnp.float32(N) * jnp.float32(k_sel))


def focal_loss(logits, targets):
    """Module's sigmoid + _neg_loss, reduced to a single scalar."""
    N, C = logits.shape
    tm = _choose_tile(N)
    n_tiles = (N + tm - 1) // tm

    parts = pl.pallas_call(
        _make_focal_kernel(tm, N),
        out_shape=jax.ShapeDtypeStruct((n_tiles * 8, 128), jnp.float32),
        grid=(n_tiles,),
        in_specs=[pl.BlockSpec((tm, C), lambda i: (i, 0)),
                  pl.BlockSpec((tm, C), lambda i: (i, 0))],
        out_specs=pl.BlockSpec((8, 128), lambda i: (i, 0)),
        compiler_params=pltpu.CompilerParams(
            dimension_semantics=("parallel",),
            vmem_limit_bytes=_VMEM_LIMIT),
    )(logits, targets)
    pos_sum = jnp.sum(parts[:, 0])
    neg_sum = jnp.sum(parts[:, 1])
    num_pos = jnp.sum(parts[:, 2])
    # loss = -neg_sum                      if num_pos == 0
    #        -(pos_sum+neg_sum)/num_pos    otherwise
    return jnp.where(num_pos == 0.0,
                     -neg_sum,
                     -(pos_sum + neg_sum) / jnp.maximum(num_pos, 1.0))


# ----------------------------------------------------------------------------
# Glue (parameter setup, target post-processing, federated index selection)
# ----------------------------------------------------------------------------
def load_class_freq(freq_weight=0.5, num_classes=NUM_ATT_CLASSES):
    # TODO(synk): original loads per-class frequencies from a json file; we
    # synthesize deterministic frequencies instead.
    freq = jnp.arange(1, num_classes + 1, dtype=jnp.float32)
    freq = freq / jnp.sum(freq)
    return jnp.power(freq, freq_weight)


def get_fed_loss_inds(appeared_mask, num_sample_cats, weight):
    # TODO(synk): torch.multinomial (random weighted sampling without
    # replacement) replaced by a deterministic weighted top-k; appeared gt
    # classes are always included, matching the original semantics.
    priority = jnp.where(appeared_mask, jnp.inf, weight.astype(jnp.float32))
    _, inds = jax.lax.top_k(priority, num_sample_cats)
    return inds


class SetCriterionATT:
    def __init__(self, num_att_classes, weight_dict, losses, loss_type, args=None):
        assert loss_type in ('bce', 'focal')
        self.num_att_classes = num_att_classes
        self.weight_dict = weight_dict
        self.losses = losses
        self.loss_type = loss_type
        self.fed_loss_weight = load_class_freq(0.5, num_att_classes)

    def postprocess_att(self, targets):
        pos, neg = [], []
        for target in targets:
            nb = target['boxes'].shape[0]
            npos = target['pos_att_classes'].shape[0]
            if nb > 0 and npos == nb:
                pos.append(target['pos_att_classes'])
                neg.append(target['neg_att_classes'])
            elif nb == 1 and npos > nb:
                s = jnp.sum(target['pos_att_classes'], axis=0, keepdims=True)
                pos.append(s)
                neg.append(s)
            elif nb > 1 and nb != npos:
                tmp = -jnp.ones((nb, self.num_att_classes), dtype=jnp.float32)
                pos.append(tmp)
                neg.append(tmp)
        return jnp.concatenate(pos, axis=0), jnp.concatenate(neg, axis=0)

    def loss_att_labels(self, outputs, targets, log=True):
        src_logits = outputs['att_preds']                       # [N, C]
        pos_labels, neg_labels = self.postprocess_att(targets)  # [N, C] each
        assert pos_labels.shape[0] == src_logits.shape[0]
        assert neg_labels.shape[0] == src_logits.shape[0]

        # target_classes = zeros; 1 where pos_labels == 1.  Targets are exactly
        # 0/1, so ship them as bf16 (lossless) to halve their HBM bytes.
        target_classes = (pos_labels == 1).astype(jnp.bfloat16)

        # Federated-loss class selection, fully device-side (no host sync).
        appeared = jnp.any(pos_labels == 1, axis=0) | jnp.any(neg_labels == 1, axis=0)
        inds = get_fed_loss_inds(appeared, NUM_SAMPLE_CATS, self.fed_loss_weight)

        C = src_logits.shape[1]
        if self.loss_type == 'bce':
            # Lane-dense column mask instead of a cross-lane gather of 50/620 cols.
            col_mask = jnp.zeros((C,), jnp.bfloat16).at[inds].set(1.0)
            loss_att_ce = bce_fed_loss(src_logits.astype(jnp.float32),
                                       target_classes, col_mask,
                                       k_sel=NUM_SAMPLE_CATS)
        else:  # focal
            loss_att_ce = focal_loss(src_logits.astype(jnp.float32), target_classes)
        return {'loss_att_ce': loss_att_ce}

    def get_loss(self, loss, outputs, targets, **kwargs):
        loss_map = {'att_labels': self.loss_att_labels}
        return loss_map[loss](outputs, targets, **kwargs)

    def forward(self, outputs, targets):
        losses = {}
        for loss in self.losses:
            losses.update(self.get_loss(loss, outputs, targets))
        return losses

    __call__ = forward


# ----------------------------------------------------------------------------
# Demo
# ----------------------------------------------------------------------------
if __name__ == "__main__":
    key = jax.random.PRNGKey(0)
    k_log, k_b1, k_b2, k_n1, k_n2, k_bx1, k_bx2 = jax.random.split(key, 7)

    C = NUM_ATT_CLASSES
    nb1, nb2 = 3, 5
    N = nb1 + nb2

    # predicted attribute logits for all boxes across the batch
    att_preds = jax.random.normal(k_log, (N, C), dtype=jnp.float32)
    outputs = {'att_preds': att_preds}

    # per-image targets: boxes + binary pos/neg attribute labels per box
    targets = [
        {
            'boxes': jax.random.uniform(k_bx1, (nb1, 4), dtype=jnp.float32),
            'pos_att_classes': jax.random.bernoulli(k_b1, 0.02, (nb1, C)).astype(jnp.float32),
            'neg_att_classes': jax.random.bernoulli(k_n1, 0.02, (nb1, C)).astype(jnp.float32),
        },
        {
            'boxes': jax.random.uniform(k_bx2, (nb2, 4), dtype=jnp.float32),
            'pos_att_classes': jax.random.bernoulli(k_b2, 0.02, (nb2, C)).astype(jnp.float32),
            'neg_att_classes': jax.random.bernoulli(k_n2, 0.02, (nb2, C)).astype(jnp.float32),
        },
    ]

    weight_dict = {'loss_att_ce': 1.0}

    crit_bce = SetCriterionATT(C, weight_dict, ['att_labels'], 'bce')
    losses_bce = crit_bce(outputs, targets)
    jax.block_until_ready(losses_bce['loss_att_ce'])

    crit_focal = SetCriterionATT(C, weight_dict, ['att_labels'], 'focal')
    losses_focal = crit_focal(outputs, targets)
    jax.block_until_ready(losses_focal['loss_att_ce'])

    assert np.isfinite(float(losses_bce['loss_att_ce']))
    assert np.isfinite(float(losses_focal['loss_att_ce']))
    print("KERNEL_OK")
</pallas_src>

<mosaic_0001>
module attributes {stable_mosaic.version = 11 : i64} {
  func.func @kernel(%arg0: i32, %arg1: memref<8x620xf32, #tpu.memory_space<vmem>>, %arg2: memref<8x620xbf16, #tpu.memory_space<vmem>>, %arg3: memref<1x620xbf16, #tpu.memory_space<vmem>>, %arg4: memref<8x128xf32, #tpu.memory_space<vmem>>) attributes {dimension_semantics = [#tpu.dimension_semantics<parallel>], iteration_bounds = array<i64: 1>, scalar_prefetch = 0 : i64, scratch_operands = 0 : i64, tpu.core_type = #tpu.core_type<tc>, window_params = [{transform_indices = @transform_0, window_bounds = array<i64: 8, 620>}, {transform_indices = @transform_1, window_bounds = array<i64: 8, 620>}, {pipeline_mode = #tpu.pipeline_mode<synchronous>, transform_indices = @transform_2, window_bounds = array<i64: 1, 620>}, {transform_indices = @transform_3, window_bounds = array<i64: 8, 128>}]} {
    %c0 = arith.constant 0 : index
    %c0_0 = arith.constant 0 : index
    %0 = vector.load %arg1[%c0, %c0_0] : memref<8x620xf32, #tpu.memory_space<vmem>>, vector<8x620xf32>
    %c0_1 = arith.constant 0 : index
    %c0_2 = arith.constant 0 : index
    %1 = vector.load %arg2[%c0_1, %c0_2] : memref<8x620xbf16, #tpu.memory_space<vmem>>, vector<8x620xbf16>
    %2 = arith.extf %1 : vector<8x620xbf16> to vector<8x620xf32>
    %c0_3 = arith.constant 0 : index
    %c0_4 = arith.constant 0 : index
    %3 = vector.load %arg3[%c0_3, %c0_4] : memref<1x620xbf16, #tpu.memory_space<vmem>>, vector<1x620xbf16>
    %4 = arith.extf %3 : vector<1x620xbf16> to vector<1x620xf32>
    %cst = arith.constant 0.000000e+00 : f32
    %5 = vector.broadcast %cst : f32 to vector<8x620xf32>
    %6 = arith.maximumf %0, %5 : vector<8x620xf32>
    %7 = arith.mulf %0, %2 : vector<8x620xf32>
    %8 = arith.subf %6, %7 : vector<8x620xf32>
    %9 = math.absf %0 : vector<8x620xf32>
    %cst_5 = arith.constant 0.000000e+00 : f32
    %10 = vector.broadcast %cst_5 : f32 to vector<8x620xf32>
    %11 = arith.subf %10, %9 : vector<8x620xf32>
    %12 = math.exp %11 : vector<8x620xf32>
    %13 = math.log1p %12 : vector<8x620xf32>
    %14 = arith.addf %8, %13 : vector<8x620xf32>
    %c8_i32 = arith.constant 8 : i32
    %15 = arith.muli %arg0, %c8_i32 : i32
    %16 = tpu.iota {dimensions = array<i32: 0>} : vector<8x1xi32>
    %17 = vector.broadcast %15 : i32 to vector<8x1xi32>
    %18 = arith.addi %17, %16 : vector<8x1xi32>
    %c8_i32_6 = arith.constant 8 : i32
    %19 = vector.broadcast %c8_i32_6 : i32 to vector<8x1xi32>
    %20 = arith.cmpi slt, %18, %19 : vector<8x1xi32>
    %cst_7 = arith.constant 0.000000e+00 : f32
    %21 = vector.shape_cast %20 : vector<8x1xi1> to vector<8x1xi1>
    %22 = vector.broadcast %21 : vector<8x1xi1> to vector<8x620xi1>
    %23 = vector.broadcast %cst_7 : f32 to vector<8x620xf32>
    %24 = arith.select %22, %14, %23 : vector<8x620xi1>, vector<8x620xf32>
    %25 = vector.broadcast %4 : vector<1x620xf32> to vector<8x620xf32>
    %26 = arith.mulf %24, %25 : vector<8x620xf32>
    %27 = vector.shape_cast %26 : vector<8x620xf32> to vector<1x8x620xf32>
    %cst_8 = arith.constant dense<0.000000e+00> : vector<1xf32>
    %28 = vector.multi_reduction <add>, %27, %cst_8 [1, 2] : vector<1x8x620xf32> to vector<1xf32>
    %29 = vector.shape_cast %28 : vector<1xf32> to vector<1x1x1xf32>
    %30 = vector.extract %29[0, 0, 0] : f32 from vector<1x1x1xf32>
    %31 = vector.broadcast %30 : f32 to vector<1x1xf32>
    %32 = tpu.iota {dimensions = array<i32: 0>} : vector<8x128xi32>
    %33 = tpu.iota {dimensions = array<i32: 1>} : vector<8x128xi32>
    %c0_i32 = arith.constant 0 : i32
    %34 = vector.broadcast %c0_i32 : i32 to vector<8x128xi32>
    %35 = arith.cmpi eq, %32, %34 : vector<8x128xi32>
    %c0_i32_9 = arith.constant 0 : i32
    %36 = vector.broadcast %c0_i32_9 : i32 to vector<8x128xi32>
    %37 = arith.cmpi eq, %33, %36 : vector<8x128xi32>
    %38 = arith.andi %35, %37 : vector<8x128xi1>
    %cst_10 = arith.constant 0.000000e+00 : f32
    %39 = vector.shape_cast %31 : vector<1x1xf32> to vector<1x1xf32>
    %40 = vector.broadcast %39 : vector<1x1xf32> to vector<8x128xf32>
    %41 = vector.broadcast %cst_10 : f32 to vector<8x128xf32>
    %42 = arith.select %38, %40, %41 : vector<8x128xi1>, vector<8x128xf32>
    %c0_11 = arith.constant 0 : index
    %c0_12 = arith.constant 0 : index
    %43 = vector.load %arg4[%c0_11, %c0_12] : memref<8x128xf32, #tpu.memory_space<vmem>>, vector<8x128xf32>
    tpu.vector_store %arg4[%c0_11, %c0_12], %42 {strides = array<i32>} : memref<8x128xf32, #tpu.memory_space<vmem>>, vector<8x128xf32>,
    return
  }
  func.func @transform_0(%arg0: i32) -> (i32, i32) {
    %c0_i32 = arith.constant 0 : i32
    %c0_i32_0 = arith.constant 0 : i32
    return %arg0, %c0_i32 : i32, i32
  }
  func.func @transform_1(%arg0: i32) -> (i32, i32) {
    %c0_i32 = arith.constant 0 : i32
    %c0_i32_0 = arith.constant 0 : i32
    return %arg0, %c0_i32 : i32, i32
  }
  func.func @transform_2(%arg0: i32) -> (i32, i32) {
    %c0_i32 = arith.constant 0 : i32
    %c0_i32_0 = arith.constant 0 : i32
    %c0_i32_1 = arith.constant 0 : i32
    return %c0_i32, %c0_i32_0 : i32, i32
  }
  func.func @transform_3(%arg0: i32) -> (i32, i32) {
    %c0_i32 = arith.constant 0 : i32
    %c0_i32_0 = arith.constant 0 : i32
    return %arg0, %c0_i32 : i32, i32
  }
}

</mosaic_0001>

<bundles_post_ra>
// kernel: tpu_custom_call.1
= control target key start
LH: loop header
LB: loop body
LE: loop exit
PB: predicated region body
PF: predicated region fallthrough
CT: control target
= control target key end

     0   :  { %8 = vsyncpa [#allocation3], 0  ;;  %s494_s0 = inlined_call_operand.hbm [shape: f32[8,620], index: 0, kind: input, shape index: {}]   ;;  %s495_s1 = inlined_call_operand.hbm [shape: bf16[8,620], index: 1, kind: input, shape index: {}]   ;;  %s496_s2 = inlined_call_operand.hbm [shape: bf16[1,620], index: 2, kind: input, shape index: {}]   ;;  %s497_s3 = inlined_call_operand.hbm [shape: f32[8,128], index: 3, kind: output, shape index: {}]  }
   0x1   :  { %9 = vsyncpa [#allocation6], 0 }
   0x2   :  { %10 = vsyncpa [#allocation4], 0  ;;  %s367_s12 = smov [#allocation5]   ;;  %s368_s14 = smov [#allocation2]  }
   0x3   :  { %s27_s13 = sshll.u32 %s367_s12, 4  ;;  %s17_s15 = sshll.u32 %s368_s14, 4  ;;  %s28_s13 = int_to_ptr.vmem [resolvable:$true] %s27_s13  ;;  %s18_s15 = int_to_ptr.vmem [resolvable:$true] %s17_s15 }
   0x4   :  { %s289_s16 = scalar_lea.vmem %s28_s13, 320  ;;  %p294_p1 = scmp.lt.s32.totalorder %s28_s13, %s28_s13 }
   0x5   :  { %p290_p0 = scmp.ne.s32.totalorder %s28_s13, %s289_s16  ;;  %p295_p2 = scmp.lt.s32.totalorder %s289_s16, %s289_s16 }
   0x7   :  { %p296_p3 = por %p295_p2, %p294_p1 }
   0x9   :  { %p297_p4 = pnand %p296_p3, %p290_p0 }
   0xb   :  { %300 = shalt.err (!%p297_p4)
}
   0xc   :  { %30 = dma.hbm_to_vmem [thread:$0]  %s495_s1, 320, %s28_s13, [#allocation6]  }
   0xd   :  { %s309_s19 = scalar_lea.vmem %s18_s15, 640  ;;  %p314_p6 = scmp.lt.s32.totalorder %s18_s15, %s18_s15 }
   0xe   :  { %p310_p5 = scmp.ne.s32.totalorder %s18_s15, %s309_s19  ;;  %p315_p7 = scmp.lt.s32.totalorder %s309_s19, %s309_s19 }
  0x10   :  { %p316_p8 = por %p315_p7, %p314_p6 }
  0x12   :  { %p317_p9 = pnand %p316_p8, %p310_p5 }
  0x14   :  { %320 = shalt.err (!%p317_p9)
}
  0x15   :  { %20 = dma.hbm_to_vmem [thread:$0]  %s494_s0, 640, %s18_s15, [#allocation3]  }
  0x16   :  { %s369_s22 = smov [#allocation7]  }
  0x17   :  { %s37_s23 = sshll.u32 %s369_s22, 4  ;;  %s38_s23 = int_to_ptr.vmem [resolvable:$true] %s37_s23 }
  0x18   :  { %s329_s24 = scalar_lea.vmem %s38_s23, 80  ;;  %s333_s25 = scalar_lea.vmem %s38_s23, 96 }
  0x19   :  { %p330_p10 = scmp.ne.s32.totalorder %s38_s23, %s329_s24  ;;  %p334_p11 = scmp.lt.s32.totalorder %s38_s23, %s38_s23 }
  0x1a   :  { %p335_p12 = scmp.lt.s32.totalorder %s333_s25, %s329_s24 }
  0x1c   :  { %p336_p13 = por %p335_p12, %p334_p11 }
  0x1e   :  { %p337_p0 = pnand %p336_p13, %p330_p10 }
  0x20   :  { %340 = shalt.err (!%p337_p0)
}
  0x21   :  { %40 = dma.hbm_to_vmem [thread:$0]  %s496_s2, 80, %s38_s23, [#allocation6]  }
  0x22   :  { %361 = dma.done.wait [#allocation3], 640  }
  0x23   :  { %362 = vsyncadd [#allocation3], 4294966656 }
  0x24   :  { %363 = dma.done.wait [#allocation6], 400  }
  0x25   :  { %364 = vsyncadd [#allocation6], 4294966896  ;;  %v400_v0 = vld [vmem:[#allocation2] sm:$0xff]  ;;  %v402_v1 = vld [vmem:[#allocation2 + $0x8] sm:$0xff]  ;;  %v152_v20 = vlaneseq  ;;  %vm219_vm5 = vcmask 883712   ;;  %s370_s0 = smov [#allocation8]  }
  0x26   :  { %v404_v2 = vld [vmem:[#allocation2 + $0x10] sm:$0xff]  ;;  %v406_v3 = vld [vmem:[#allocation2 + $0x18] sm:$0xff]  ;;  %v408_v4 = vld [vmem:[#allocation2 + $0x20] sm:$0xff]  ;;  %v81_v5 = vand.u32 2147483647, %v400_v0  ;;  %v66_v41 = vmax.f32 %v400_v0, 0.0 }
  0x27   :  { %v82_v6 = vand.u32 2147483647, %v402_v1  ;;  %v83_v7 = vand.u32 2147483647, %v404_v2  ;;  %v84_v8 = vand.u32 2147483647, %v406_v3 }
  0x28   :  { %v85_v9 = vand.u32 2147483647, %v408_v4  ;;  %v86_v10 = vsub.f32 0.0, %v81_v5  ;;  %v55_v22 = vld [vmem:[#allocation5] sm:$0xff]  ;;  %v418_v23 = vshrl.u32 %v152_v20, 7  ;;  %v56_v25 = vld [vmem:[#allocation5 + $0x8] sm:$0xff] }
  0x29   :  { %v87_v11 = vsub.f32 0.0, %v82_v6  ;;  %v88_v12 = vsub.f32 0.0, %v83_v7  ;;  %v89_v13 = vsub.f32 0.0, %v84_v8  ;;  %v57_v30 = vld [vmem:[#allocation5 + $0x10] sm:$0xf]  ;;  %v58_v31 = vunpack.c.l.bf16 %v55_v22  ;;  %s245_s2 = sshll.u32 %s370_s0, 4  ;;  %s246_s2 = int_to_ptr.vmem [resolvable:$true] %s245_s2 }
  0x2a   :  { %v90_v14 = vsub.f32 0.0, %v85_v9  ;;  %v91_v15 = vmul.f32 1.442695, %v86_v10  ;;  %v59_v34 = vunpack.c.h.bf16 %v55_v22  ;;  %v60_v35 = vunpack.c.l.bf16 %v56_v25  ;;  %v63_v44 = vld [vmem:[#allocation7] sm:$0x1f]  ;;  %s341_s28 = scalar_lea.vmem %s246_s2, 128  ;;  %p346_p2 = scmp.lt.s32.totalorder %s246_s2, %s246_s2 }
  0x2b   :  { %v93_v16 = vmul.f32 1.442695, %v87_v11  ;;  %v95_v17 = vmul.f32 1.442695, %v88_v12  ;;  %v97_v18 = vmul.f32 1.442695, %v89_v13  ;;  %v61_v37 = vunpack.c.h.bf16 %v56_v25  ;;  %p342_p1 = scmp.ne.s32.totalorder %s246_s2, %s341_s28  ;;  %p347_p3 = scmp.lt.s32.totalorder %s341_s28, %s341_s28 }
  0x2c   :  { %261 = vpow2.f32 %v91_v15  ;;  %v99_v19 = vmul.f32 1.442695, %v90_v14  ;;  %v432_v36 = vsub.s32 0, %v418_v23  ;;  %v172_v39 = vsub.s32 2, %v418_v23 }
  0x2d   :  { %263 = vpow2.f32 %v93_v16  ;;  %v62_v40 = vunpack.c.l.bf16 %v57_v30  ;;  %v67_v42 = vmax.f32 %v402_v1, 0.0  ;;  %v176_v43 = vsub.s32 4, %v418_v23  ;;  %p348_p4 = por %p347_p3, %p346_p2 }
  0x2e   :  { %265 = vpow2.f32 %v95_v17  ;;  %v71_v45 = vmul.f32 %v58_v31, %v400_v0  ;;  %v68_v48 = vmax.f32 %v404_v2, 0.0  ;;  %v72_v49 = vmul.f32 %v59_v34, %v402_v1 }
  0x2f   :  { %267 = vpow2.f32 %v97_v18  ;;  %v73_v50 = vmul.f32 %v60_v35, %v404_v2  ;;  %v69_v52 = vmax.f32 %v406_v3, 0.0  ;;  %v74_v53 = vmul.f32 %v61_v37, %v406_v3  ;;  %p349_p5 = pnand %p348_p4, %p342_p1 }
  0x30   :  { %269 = vpow2.f32 %v99_v19  ;;  %v64_v55 = vunpack.c.l.bf16 %v63_v44  ;;  %v70_v56 = vmax.f32 %v408_v4, 0.0  ;;  %v75_v57 = vmul.f32 %v62_v40, %v408_v4 }
  0x31   :  { %v180_v58 = vsub.s32 6, %v418_v23  ;;  %v65_v59 = vunpack.c.h.bf16 %v63_v44  ;;  %v76_v60 = vsub.f32 %v66_v41, %v71_v45  ;;  %v77_v63 = vsub.f32 %v67_v42, %v72_v49 }
  0x32   :  { %v78_v0 = vsub.f32 %v68_v48, %v73_v50  ;;  %v79_v3 = vsub.f32 %v69_v52, %v74_v53  ;;  %v80_v8 = vsub.f32 %v70_v56, %v75_v57  ;;  %v169_v9 = vrot.slane %v64_v55, %v432_v36 }
  0x33   :  { %v173_v10 = vrot.slane %v64_v55, %v172_v39  ;;  %v177_v13 = vrot.slane %v64_v55, %v176_v43  ;;  %v181_v14 = vrot.slane %v64_v55, %v180_v58  ;;  %v185_v19 = vrot.slane %v65_v59, %v432_v36 }
  0x34   :  { %v194_v34 = vrot.slane %v169_v9, %v432_v36  ;;  %vm233_vm6 = vcmp.eq.s32.totalorder %v418_v23, 0 }
  0x35   :  { %v198_v39 = vrot.slane %v173_v10, %v432_v36  ;;  %v202_v42 = vrot.slane %v177_v13, %v432_v36  ;;  %v206_v48 = vrot.slane %v181_v14, %v432_v36 }
  0x39   :  { %v415_v21 = vpop.eup %261 }
  0x3a   :  { %v420_v24 = vpop.eup %263  ;;  %v101_v26 = vadd.f32 1.0, %v415_v21  ;;  %v104_v46 = vmul.f32 -0.5, %v415_v21  ;;  %v107_v1 = vand.u32 2147483647, %v415_v21 }
  0x3b   :  { %v423_v27 = vpop.eup %265  ;;  %v110_v28 = vadd.f32 1.0, %v420_v24  ;;  %v113_v51 = vmul.f32 -0.5, %v420_v24  ;;  %v116_v5 = vand.u32 2147483647, %v420_v24 }
  0x3c   :  { %v426_v29 = vpop.eup %267  ;;  %271 = vlog2.f32 %v101_v26  ;;  %v119_v32 = vadd.f32 1.0, %v423_v27  ;;  %v122_v54 = vmul.f32 -0.5, %v423_v27  ;;  %v105_v61 = vadd.f32 1.0, %v104_v46 }
  0x3d   :  { %v429_v33 = vpop.eup %269  ;;  %273 = vlog2.f32 %v110_v28  ;;  %v128_v38 = vadd.f32 1.0, %v426_v29  ;;  %v131_v62 = vmul.f32 -0.5, %v426_v29  ;;  %v114_v2 = vadd.f32 1.0, %v113_v51 }
  0x3e   :  { %275 = vlog2.f32 %v119_v32  ;;  %v137_v47 = vadd.f32 1.0, %v429_v33  ;;  %v123_v6 = vadd.f32 1.0, %v122_v54  ;;  %v140_v7 = vmul.f32 -0.5, %v429_v33 }
  0x3f   :  { %277 = vlog2.f32 %v128_v38  ;;  %v125_v4 = vand.u32 2147483647, %v423_v27  ;;  %v106_v11 = vmul.f32 %v415_v21, %v105_v61  ;;  %v132_v12 = vadd.f32 1.0, %v131_v62 }
  0x40   :  { %279 = vlog2.f32 %v137_v47  ;;  %vm459_vm0 = vcmp.lt.f32.partialorder %v107_v1, 0.0004427343  ;;  %v115_v17 = vmul.f32 %v420_v24, %v114_v2  ;;  %v134_v18 = vand.u32 2147483647, %v426_v29 }
  0x41   :  { %vm466_vm1 = vcmp.lt.f32.partialorder %v116_v5, 0.0004427343  ;;  %v124_v21 = vmul.f32 %v423_v27, %v123_v6  ;;  %v141_v28 = vadd.f32 1.0, %v140_v7  ;;  %vm471_vm2 = vcmp.lt.f32.partialorder %v125_v4, 0.0004427343 }
  0x42   :  { %v143_v24 = vand.u32 2147483647, %v429_v33  ;;  %v133_v38 = vmul.f32 %v426_v29, %v132_v12  ;;  %vm135_vm3 = vcmp.lt.f32.partialorder %v134_v18, 0.0004427343  ;;  %v210_v54 = vrot.slane %v185_v19, %v432_v36 }
  0x43   :  { %v142_v45 = vmul.f32 %v429_v33, %v141_v28  ;;  %v232_v36 = vand.u32 127, %v152_v20 }
  0x44   :  { %vm144_vm4 = vcmp.lt.f32.partialorder %v143_v24, 0.0004427343 }
  0x45   :  { %vm234_vm7 = vcmp.eq.s32.totalorder %v232_v36, 0 }
  0x46   :  { %vm235_vm8 = vmand %vm233_vm6, %vm234_vm7 }
  0x49   :  { %v272_v15 = vpop.eup %271 }
  0x4a   :  { %v274_v22 = vpop.eup %273  ;;  %v103_v25 = vmul.f32 0.6931472, %v272_v15 }
  0x4b   :  { %v276_v30 = vpop.eup %275  ;;  %v112_v31 = vmul.f32 0.6931472, %v274_v22 }
  0x4c   :  { %v109_v35 = vsel %vm459_vm0, %v106_v11, %v103_v25  ;;  %v121_v37 = vmul.f32 0.6931472, %v276_v30  ;;  %v278_v27 = vpop.eup %277 }
  0x4d   :  { %v118_v40 = vsel %vm466_vm1, %v115_v17, %v112_v31  ;;  %v146_v41 = vadd.f32 %v109_v35, %v76_v60  ;;  %v130_v44 = vmul.f32 0.6931472, %v278_v27  ;;  %v280_v47 = vpop.eup %279 }
  0x4e   :  { %v127_v43 = vsel %vm471_vm2, %v124_v21, %v121_v37  ;;  %v147_v46 = vadd.f32 %v118_v40, %v77_v63  ;;  %v139_v51 = vmul.f32 0.6931472, %v280_v47 }
  0x4f   :  { %v148_v29 = vadd.f32 %v127_v43, %v78_v0  ;;  %v211_v49 = vmul.f32 %v194_v34, %v146_v41  ;;  %v136_v50 = vsel %vm135_vm3, %v133_v38, %v130_v44 }
  0x50   :  { %v212_v52 = vmul.f32 %v198_v39, %v147_v46  ;;  %v149_v53 = vadd.f32 %v136_v50, %v79_v3  ;;  %v145_v56 = vsel %vm144_vm4, %v142_v45, %v139_v51 }
  0x51   :  { %v213_v55 = vmul.f32 %v202_v42, %v148_v29  ;;  %v150_v58 = vadd.f32 %v145_v56, %v80_v8 }
  0x52   :  { %v216_v57 = vadd.f32 %v212_v52, %v211_v49  ;;  %v214_v59 = vmul.f32 %v206_v48, %v149_v53 }
  0x53   :  { %v215_v33 = vmul.f32 %v210_v54, %v150_v58 }
  0x54   :  { %v217_v60 = vadd.f32 %v216_v57, %v213_v55 }
  0x55   :  { %v220_v62 = vsel %vm219_vm5, %v215_v33, 0.0 }
  0x56   :  { %v218_v61 = vadd.f32 %v217_v60, %v214_v59 }
  0x58   :  { %v221_v63 = vadd.f32 %v220_v62, %v218_v61 }
  0x5a   :  { %222 = vadd.xlane.f32.xlu0 %v221_v63 }
  0xe3   :  { %v223_v0 = vpop.xlane.xlu0 %222 }
  0xe4   :  { %v224_v1 = vrot.slane %v223_v0, 4 }
  0xe6   :  { %v225_v2 = vadd.f32 %v224_v1, %v223_v0 }
  0xe8   :  { %v226_v5 = vrot.slane %v225_v2, 2 }
  0xea   :  { %v227_v6 = vadd.f32 %v226_v5, %v225_v2 }
  0xec   :  { %v228_v3 = vrot.slane %v227_v6, 1 }
  0xee   :  { %v229_v7 = vadd.f32 %v228_v3, %v227_v6 }
  0xf0   :  { %255 = vpush %v229_v7 }
 0x121   :  { %s256_s27 = spop %255 }
 0x122   :  { %v236_v8 = vstv %s256_s27 }
 0x123   :  { %v237_v4 = vsel %vm235_vm8, %v236_v8, 0.0 }
 0x124   :  { %238 = vst [vmem:[#allocation8] sm:$0xff] %v237_v4 }
 0x125   :  { %352 = shalt.err (!%p349_p5)
}
 0x126   :  { %248 = dma.vmem_to_hbm [thread:$0]  %s246_s2, 128, %s497_s3, [#allocation4]  }
 0x127   :  { %365 = dma.done.wait [#allocation4], 128  }
 0x128   :  { %366 = vsyncadd [#allocation4], 4294967168 }
 0x129   :  { %252 = vsyncpa [#allocation3], 1 }
 0x12a   :  { %253 = vsyncpa [#allocation6], 1 }
 0x12b   :  { %254 = vsyncpa [#allocation4], 1 }

</bundles_post_ra>
